<compile_context>
chip_gen: v7x
topology: tpu7x:2x2x1
jax: 0.10.0
libtpu: 0.0.40
codegen_flags: <defaults>
</compile_context>

<pallas_src>
import jax
import jax.numpy as jnp
from jax.experimental import pallas as pl
from jax.experimental.pallas import tpu as pltpu

# ----------------------------- hyperparameters ------------------------------
B = 2                       # batch
L_IN = 16                   # input_chunk_length
L_OUT = 8                   # output_chunk_length
OUTPUT_DIM = 2
PAST_COV_DIM = 2
FUTURE_COV_DIM = 3
INPUT_DIM = OUTPUT_DIM + PAST_COV_DIM + FUTURE_COV_DIM   # 7
STATIC_COV_DIM = 4
NR_PARAMS = 1
NUM_ENCODER_LAYERS = 2
NUM_DECODER_LAYERS = 2
DECODER_OUTPUT_DIM = 4
HIDDEN_SIZE = 32
TEMPORAL_DECODER_HIDDEN = 16
TEMPORAL_WIDTH = 4

T_TOTAL = L_IN + L_OUT                                   # 24
N_LOOKBACK = L_IN * OUTPUT_DIM                           # 32
N_PASTCOV = L_IN * PAST_COV_DIM                          # 32
N_DYN = T_TOTAL * TEMPORAL_WIDTH                         # 96
N_FIXED = N_LOOKBACK + N_PASTCOV + STATIC_COV_DIM        # 68
N_FP_HS = HIDDEN_SIZE + TEMPORAL_WIDTH                   # 36  (FP [hidden|skip])
N_TD_HID = L_OUT * TEMPORAL_DECODER_HIDDEN               # 128
N_OUT_WIDE = L_OUT * OUTPUT_DIM * NR_PARAMS              # 16
N_DEC_WIDE = L_OUT * DECODER_OUTPUT_DIM * NR_PARAMS      # 32
OUT_PAD = 128                                            # lane-dense output width
BIAS_W = 144                                             # widest packed bias row


# ------------------------------ the fused kernel -----------------------------
def _tide_fused_kernel(
    xd_ref,        # (B*T_TOTAL, FUTURE_COV_DIM)  dyn covariates, per-timestep rows (b-major)
    fx_ref,        # (B, N_FIXED)                 [lookback | past-cov | static] flat
    wfp_a_ref,     # (3, 36)   feature-projection [W1|Ws]
    wfp_2e_ref,    # (36, 96)  feature-projection [W2; I] column-replicated over T
    we1_fix_ref,   # (68, 64)  encoder-1 [W1|Ws] rows for fx
    we1_dyn_ref,   # (96, 64)  encoder-1 [W1|Ws] rows for proj
    wmid_a_ref,    # (3, 32, 64)  enc2/dec1/dec2 [W1|Ws]
    wblk_2_ref,    # (4, 64, 32)  enc1/enc2/dec1/dec2 [W2; I]
    wtd_a_ref,     # (2, 32, 144) temporal decoder [W1|Ws] kron, split decoded/proj
    wtd_2_ref,     # (144, 16)    temporal decoder [kron(I,W2); I]
    wskip_ref,     # (32, 16)     lookback skip kron(Wls, I_outdim)
    bias_ref,      # (13, 144)    all biases, one per row, zero padded
    o_ref,         # (B, 128)     lane-dense padded output
):
    f32 = jnp.float32

    def dot(a, b):
        return jnp.dot(a, b, preferred_element_type=f32)

    def iota(shape, dim):
        return jax.lax.broadcasted_iota(jnp.int32, shape, dim)

    def brow(i, w):                       # one packed bias row, first w lanes
        return bias_ref[i:i + 1, :w]

    def masked_relu(h, width):            # ReLU on lanes [0, width), identity above
        return jnp.where(iota(h.shape, 1) < width, jnp.maximum(h, 0.0), h)

    xd = xd_ref[...]                      # (B*T, 3)
    fx = fx_ref[...]                      # (B, 68)
    bsz = fx.shape[0]

    # ---- feature projection: per-timestep rows (de-kroned) -----------------
    h = dot(xd, wfp_a_ref[...]) + brow(0, N_FP_HS)             # (B*T, 36)
    h = masked_relu(h, HIDDEN_SIZE)
    pe = dot(h, wfp_2e_ref[...]) + brow(1, N_DYN)              # (B*T, 96) col-replicated

    # keep each row's own timestep block, then sum rows per batch
    #   -> proj (B, 96) in the module's flatten(start_dim=1) order.
    ri = iota(pe.shape, 0)
    ci = iota(pe.shape, 1)
    b_of_r = jnp.zeros_like(ri)
    for j in range(1, bsz):
        b_of_r = b_of_r + jnp.where(ri >= j * T_TOTAL, 1, 0)
    t_of_r = ri - T_TOTAL * b_of_r
    lo = t_of_r * TEMPORAL_WIDTH
    pm = jnp.where((ci >= lo) & (ci < lo + TEMPORAL_WIDTH), pe, 0.0)
    sb = iota((bsz, bsz * T_TOTAL), 0)
    sr = iota((bsz, bsz * T_TOTAL), 1)
    b_of_sr = jnp.zeros_like(sr)
    for j in range(1, bsz):
        b_of_sr = b_of_sr + jnp.where(sr >= j * T_TOTAL, 1, 0)
    S = jnp.where(b_of_sr == sb, 1.0, 0.0)                     # (B, B*T)
    proj = dot(S, pm)                                          # (B, 96)

    # ---- encoder 1 ([W1|Ws] merged; masked ReLU + stacked [W2; I]) ---------
    lane64 = iota((bsz, 2 * HIDDEN_SIZE), 1) < HIDDEN_SIZE
    h = dot(fx, we1_fix_ref[...]) + dot(proj, we1_dyn_ref[...]) + brow(2, 2 * HIDDEN_SIZE)
    h = jnp.where(lane64, jnp.maximum(h, 0.0), h)
    e = dot(h, wblk_2_ref[0, :, :]) + brow(6, HIDDEN_SIZE)     # (B, 32)

    # ---- encoder 2 / decoder 1 / decoder 2 ---------------------------------
    for i in range(3):
        h = dot(e, wmid_a_ref[i, :, :]) + brow(3 + i, 2 * HIDDEN_SIZE)
        h = jnp.where(lane64, jnp.maximum(h, 0.0), h)
        e = dot(h, wblk_2_ref[1 + i, :, :]) + brow(7 + i, HIDDEN_SIZE)
    decoded = e                                                # (B, 32)

    # ---- temporal decoder (kron-wide, zero block removed) ------------------
    proj_tail = proj[:, L_IN * TEMPORAL_WIDTH:]                # (B, 32) last 8 timesteps
    h = (dot(decoded, wtd_a_ref[0, :, :]) + dot(proj_tail, wtd_a_ref[1, :, :])
         + brow(10, N_TD_HID + N_OUT_WIDE))                    # (B, 144)
    h = masked_relu(h, N_TD_HID)
    td = dot(h, wtd_2_ref[...]) + brow(11, N_OUT_WIDE)         # (B, 16)

    # ---- lookback skip + final add; lane-dense padded store ----------------
    skip = dot(fx[:, :N_LOOKBACK], wskip_ref[...]) + brow(12, N_OUT_WIDE)
    y = td + skip                                              # (B, 16)
    pad = jnp.zeros((bsz, OUT_PAD - N_OUT_WIDE), f32)
    o_ref[...] = jnp.concatenate([y, pad], axis=1).astype(o_ref.dtype)


# ------------------------------ parameter init -------------------------------
def _init_linear(key, d_in, d_out):
    """PyTorch nn.Linear-style uniform init; weight stored (d_in, d_out)."""
    kw, kb = jax.random.split(key)
    bound = 1.0 / jnp.sqrt(jnp.float32(d_in))
    w = jax.random.uniform(kw, (d_in, d_out), jnp.float32, -bound, bound)
    b = jax.random.uniform(kb, (1, d_out), jnp.float32, -bound, bound)
    return w, b


def _init_residual_block(key, d_in, hidden, d_out):
    k1, k2, k3 = jax.random.split(key, 3)
    w1, b1 = _init_linear(k1, d_in, hidden)
    w2, b2 = _init_linear(k2, hidden, d_out)
    ws, bs = _init_linear(k3, d_in, d_out)
    return {"w1": w1, "b1": b1, "w2": w2, "b2": b2, "ws": ws, "bs": bs}


def init_params(key):
    keys = jax.random.split(key, 8)
    encoder_dim = N_FIXED + N_DYN                                 # 164
    params = {
        "feature_projection": _init_residual_block(
            keys[0], FUTURE_COV_DIM, HIDDEN_SIZE, TEMPORAL_WIDTH),
        "encoders": [
            _init_residual_block(keys[1], encoder_dim, HIDDEN_SIZE, HIDDEN_SIZE),
            _init_residual_block(keys[2], HIDDEN_SIZE, HIDDEN_SIZE, HIDDEN_SIZE),
        ][:NUM_ENCODER_LAYERS],
        "decoders": [
            _init_residual_block(keys[3], HIDDEN_SIZE, HIDDEN_SIZE, HIDDEN_SIZE),
            _init_residual_block(keys[4], HIDDEN_SIZE, HIDDEN_SIZE,
                                 DECODER_OUTPUT_DIM * L_OUT * NR_PARAMS),
        ],
        "temporal_decoder": _init_residual_block(
            keys[5],
            DECODER_OUTPUT_DIM * NR_PARAMS + TEMPORAL_WIDTH,
            TEMPORAL_DECODER_HIDDEN,
            OUTPUT_DIM * NR_PARAMS),
    }
    w, b = _init_linear(keys[6], L_IN, L_OUT * NR_PARAMS)
    params["lookback_skip"] = {"w": w, "b": b}
    return params


# ----------------------- fused-weight preprocessing (once) --------------------
def prepare_fused_params(params):
    # These foldings are only valid for this configuration; fail loudly otherwise.
    assert NR_PARAMS == 1, "fused TiDE kernel assumes nr_params == 1"
    assert FUTURE_COV_DIM > 0, "fused TiDE kernel assumes future covariates exist"
    assert NUM_ENCODER_LAYERS == 2 and NUM_DECODER_LAYERS == 2

    f32 = jnp.float32
    eye_tw = jnp.eye(TEMPORAL_WIDTH, dtype=f32)
    eye_h = jnp.eye(HIDDEN_SIZE, dtype=f32)
    eye_o = jnp.eye(L_OUT, dtype=f32)

    # feature projection: [W1|Ws] merged; second weight stacked with I and
    # column-replicated across T (kernel's diagonal-select recovers wide proj).
    fp = params["feature_projection"]
    wfp_a = jnp.concatenate([fp["w1"], fp["ws"]], axis=1)              # (3, 36)
    bfp_a = jnp.concatenate([fp["b1"], fp["bs"]], axis=1)              # (1, 36)
    wfp_2s = jnp.concatenate([fp["w2"], eye_tw], axis=0)               # (36, 4)
    rep = jnp.tile(eye_tw, (1, T_TOTAL))                               # (4, 96)
    wfp_2e = wfp_2s @ rep                                              # (36, 96)
    bfp_2e = jnp.tile(fp["b2"], (1, T_TOTAL))                          # (1, 96)

    # encoder 1: merge [W1|Ws]; split rows fixed (lookback/pastcov/static) vs dyn (proj)
    e1 = params["encoders"][0]
    we1 = jnp.concatenate([e1["w1"], e1["ws"]], axis=1)                # (164, 64)
    be1_a = jnp.concatenate([e1["b1"], e1["bs"]], axis=1)              # (1, 64)
    n_head = N_LOOKBACK + N_PASTCOV
    we1_fix = jnp.concatenate([we1[:n_head], we1[n_head + N_DYN:]], axis=0)  # (68, 64)
    we1_dyn = we1[n_head:n_head + N_DYN]                               # (96, 64)

    # encoder 2 / decoder 1 / decoder 2, stacked; [W2; I] folds the skip add
    mids = [params["encoders"][1], params["decoders"][0], params["decoders"][1]]
    wmid_a = jnp.stack([jnp.concatenate([p["w1"], p["ws"]], axis=1) for p in mids])
    wblk_2 = jnp.stack([jnp.concatenate([p["w2"], eye_h], axis=0) for p in [e1] + mids])

    # temporal decoder: wide (kron) form, split by input source, no zero block
    td = params["temporal_decoder"]
    d = DECODER_OUTPUT_DIM * NR_PARAMS
    w1_dec, w1_proj = td["w1"][:d], td["w1"][d:]
    ws_dec, ws_proj = td["ws"][:d], td["ws"][d:]
    wtd_dec = jnp.concatenate([jnp.kron(eye_o, w1_dec), jnp.kron(eye_o, ws_dec)], axis=1)
    wtd_proj = jnp.concatenate([jnp.kron(eye_o, w1_proj), jnp.kron(eye_o, ws_proj)], axis=1)
    wtd_a = jnp.stack([wtd_dec, wtd_proj])                             # (2, 32, 144)
    btd_a = jnp.concatenate([jnp.tile(td["b1"], (1, L_OUT)),
                             jnp.tile(td["bs"], (1, L_OUT))], axis=1)  # (1, 144)
    wtd_2 = jnp.concatenate([jnp.kron(eye_o, td["w2"]),
                             jnp.eye(N_OUT_WIDE, dtype=f32)], axis=0)  # (144, 16)
    btd_2 = jnp.tile(td["b2"], (1, L_OUT))                             # (1, 16)

    # lookback skip: Linear over time, kron-expanded into the wide output layout
    # (folds both transposes + reshape_as; valid for nr_params == 1 only).
    ls = params["lookback_skip"]
    wskip = jnp.kron(ls["w"], jnp.eye(OUTPUT_DIM, dtype=f32))          # (32, 16)
    bskip = jnp.repeat(ls["b"], OUTPUT_DIM, axis=1)                    # (1, 16)

    # all biases packed into one (13, 144) array, one per row
    def pad_row(b):
        return jnp.pad(b, ((0, 0), (0, BIAS_W - b.shape[1])))
    bias_rows = ([bfp_a, bfp_2e, be1_a]
                 + [jnp.concatenate([p["b1"], p["bs"]], axis=1) for p in mids]
                 + [e1["b2"]] + [p["b2"] for p in mids]
                 + [btd_a, btd_2, bskip])
    biases = jnp.concatenate([pad_row(r) for r in bias_rows], axis=0)  # (13, 144)

    return (wfp_a, wfp_2e, we1_fix, we1_dyn, wmid_a, wblk_2,
            wtd_a, wtd_2, wskip, biases)


# ------------------------------- fused forward --------------------------------
def _tide_forward_fused(fused, x_past, x_future_covariates, x_static_covariates):
    bsz = x_past.shape[0]
    x_lookback = x_past[:, :, :OUTPUT_DIM]
    x_past_cov = x_past[:, :, OUTPUT_DIM:OUTPUT_DIM + PAST_COV_DIM]
    # Concat order [x_future, future-cov slice of x_past] along time matches the module.
    x_dyn = jnp.concatenate([x_future_covariates, x_past[:, :, -FUTURE_COV_DIM:]], axis=1)

    # Raw-input plumbing only (cheap XLA glue).
    xd_flat = x_dyn.reshape(bsz * T_TOTAL, FUTURE_COV_DIM)             # (B*T, 3), b-major
    fx = jnp.concatenate([x_lookback.reshape(bsz, -1),
                          x_past_cov.reshape(bsz, -1),
                          x_static_covariates], axis=1)                # (B, 68)

    operands = (xd_flat, fx) + tuple(fused)
    bytes_accessed = sum(int(a.size) * 4 for a in operands) + bsz * OUT_PAD * 4
    flops = 2 * (
        bsz * T_TOTAL * FUTURE_COV_DIM * N_FP_HS
        + bsz * T_TOTAL * N_FP_HS * N_DYN
        + bsz * (bsz * T_TOTAL) * N_DYN
        + bsz * (N_FIXED + N_DYN) * 2 * HIDDEN_SIZE
        + 3 * bsz * HIDDEN_SIZE * 2 * HIDDEN_SIZE
        + 4 * bsz * 2 * HIDDEN_SIZE * HIDDEN_SIZE
        + 2 * bsz * N_DEC_WIDE * (N_TD_HID + N_OUT_WIDE)
        + bsz * (N_TD_HID + N_OUT_WIDE) * N_OUT_WIDE
        + bsz * N_LOOKBACK * N_OUT_WIDE)

    vmem = pl.BlockSpec(memory_space=pltpu.MemorySpace.VMEM)
    y_wide = pl.pallas_call(
        _tide_fused_kernel,
        out_shape=jax.ShapeDtypeStruct((bsz, OUT_PAD), jnp.float32),
        in_specs=[vmem] * len(operands),
        out_specs=vmem,
        cost_estimate=pl.CostEstimate(flops=flops, transcendentals=0,
                                      bytes_accessed=bytes_accessed),
    )(*operands)

    return y_wide[:, :N_OUT_WIDE].reshape(bsz, L_OUT, OUTPUT_DIM, NR_PARAMS)


tide_forward = jax.jit(_tide_forward_fused)


# --------------------------- pure-JAX reference (check) -----------------------
_HI = jax.lax.Precision.HIGHEST


def _mm(a, b):
    return jnp.dot(a, b, precision=_HI)


def _resblock_ref(x, p):
    h = jnp.maximum(_mm(x, p["w1"]) + p["b1"], 0.0)
    return _mm(h, p["w2"]) + p["b2"] + _mm(x, p["ws"]) + p["bs"]


def tide_forward_ref(params, x_past, x_future, x_static):
    x = x_past
    b = x.shape[0]
    x_lookback = x[:, :, :OUTPUT_DIM]
    x_dyn = jnp.concatenate([x_future, x[:, :, -FUTURE_COV_DIM:]], axis=1)
    proj = _resblock_ref(x_dyn.reshape(b * T_TOTAL, FUTURE_COV_DIM),
                         params["feature_projection"]).reshape(b, T_TOTAL, TEMPORAL_WIDTH)
    x_past_cov = x[:, :, OUTPUT_DIM:-FUTURE_COV_DIM]
    encoded = jnp.concatenate([x_lookback.reshape(b, -1), x_past_cov.reshape(b, -1),
                               proj.reshape(b, -1), x_static], axis=1)
    for p in params["encoders"]:
        encoded = _resblock_ref(encoded, p)
    decoded = encoded
    for p in params["decoders"]:
        decoded = _resblock_ref(decoded, p)
    decoded = decoded.reshape(b, L_OUT, DECODER_OUTPUT_DIM * NR_PARAMS)
    tdi = jnp.concatenate([decoded, proj[:, -L_OUT:, :]], axis=2)
    td = _resblock_ref(tdi.reshape(b * L_OUT, -1),
                       params["temporal_decoder"]).reshape(b, L_OUT, OUTPUT_DIM * NR_PARAMS)
    ls = params["lookback_skip"]
    skip = (_mm(jnp.transpose(x_lookback, (0, 2, 1)).reshape(b * OUTPUT_DIM, L_IN), ls["w"])
            + ls["b"]).reshape(b, OUTPUT_DIM, L_OUT * NR_PARAMS)
    skip = jnp.transpose(skip, (0, 2, 1)).reshape(b, L_OUT, OUTPUT_DIM * NR_PARAMS)
    y = td + skip
    return y.reshape(b, L_OUT, OUTPUT_DIM, NR_PARAMS)


# ----------------------------------- main --------------------------------------
if __name__ == "__main__":
    key = jax.random.PRNGKey(0)
    kp, kx1, kx2, kx3 = jax.random.split(key, 4)

    params = init_params(kp)
    fused = prepare_fused_params(params)

    x_past = jax.random.normal(kx1, (B, L_IN, INPUT_DIM), dtype=jnp.float32)
    x_future = jax.random.normal(kx2, (B, L_OUT, FUTURE_COV_DIM), dtype=jnp.float32)
    x_static = jax.random.normal(kx3, (B, STATIC_COV_DIM), dtype=jnp.float32)

    y = tide_forward(fused, x_past, x_future, x_static)
    y = jax.block_until_ready(y)

    assert y.shape == (B, L_OUT, OUTPUT_DIM, NR_PARAMS), y.shape
    assert bool(jnp.all(jnp.isfinite(y)))

    # tight f32 check against a pure-JAX (Precision.HIGHEST) mirror of the module
    y_ref = tide_forward_ref(params, x_past, x_future, x_static)
    max_err = float(jnp.max(jnp.abs(y - y_ref)))
    assert bool(jnp.allclose(y, y_ref, atol=1e-4, rtol=1e-4)), max_err

    print("KERNEL_OK")
</pallas_src>

<mosaic_0001>
module attributes {stable_mosaic.version = 11 : i64} {
  func.func @_tide_fused_kernel(%arg0: memref<48x3xf32, #tpu.memory_space<vmem>>, %arg1: memref<2x68xf32, #tpu.memory_space<vmem>>, %arg2: memref<3x36xf32, #tpu.memory_space<vmem>>, %arg3: memref<36x96xf32, #tpu.memory_space<vmem>>, %arg4: memref<68x64xf32, #tpu.memory_space<vmem>>, %arg5: memref<96x64xf32, #tpu.memory_space<vmem>>, %arg6: memref<3x32x64xf32, #tpu.memory_space<vmem>>, %arg7: memref<4x64x32xf32, #tpu.memory_space<vmem>>, %arg8: memref<2x32x144xf32, #tpu.memory_space<vmem>>, %arg9: memref<144x16xf32, #tpu.memory_space<vmem>>, %arg10: memref<32x16xf32, #tpu.memory_space<vmem>>, %arg11: memref<13x144xf32, #tpu.memory_space<vmem>>, %arg12: memref<2x128xf32, #tpu.memory_space<vmem>>) attributes {dimension_semantics = [], scalar_prefetch = 0 : i64, scratch_operands = 0 : i64, tpu.core_type = #tpu.core_type<tc>} {
    %c0 = arith.constant 0 : index
    %c0_0 = arith.constant 0 : index
    %0 = vector.load %arg0[%c0, %c0_0] : memref<48x3xf32, #tpu.memory_space<vmem>>, vector<48x3xf32>
    %c0_1 = arith.constant 0 : index
    %c0_2 = arith.constant 0 : index
    %1 = vector.load %arg1[%c0_1, %c0_2] : memref<2x68xf32, #tpu.memory_space<vmem>>, vector<2x68xf32>
    %c0_3 = arith.constant 0 : index
    %c0_4 = arith.constant 0 : index
    %2 = vector.load %arg2[%c0_3, %c0_4] : memref<3x36xf32, #tpu.memory_space<vmem>>, vector<3x36xf32>
    %cst = arith.constant dense<0.000000e+00> : vector<48x36xf32>
    %3 = tpu.matmul %0, %2, %cst {dimension_numbers = #tpu.dot_dimension_numbers<[1], [0], [0], [1], [0, 0, 1, 1], [], []>} : vector<48x3xf32>, vector<3x36xf32>, vector<48x36xf32> -> vector<48x36xf32>
    %c0_5 = arith.constant 0 : index
    %c0_6 = arith.constant 0 : index
    %4 = vector.load %arg11[%c0_5, %c0_6] : memref<13x144xf32, #tpu.memory_space<vmem>>, vector<1x36xf32>
    %5 = vector.broadcast %4 : vector<1x36xf32> to vector<48x36xf32>
    %6 = arith.addf %3, %5 : vector<48x36xf32>
    %7 = tpu.iota {dimensions = array<i32: 1>} : vector<48x36xi32>
    %c32_i32 = arith.constant 32 : i32
    %8 = vector.broadcast %c32_i32 : i32 to vector<48x36xi32>
    %9 = arith.cmpi slt, %7, %8 : vector<48x36xi32>
    %cst_7 = arith.constant 0.000000e+00 : f32
    %10 = vector.broadcast %cst_7 : f32 to vector<48x36xf32>
    %11 = arith.maximumf %6, %10 : vector<48x36xf32>
    %12 = arith.select %9, %11, %6 : vector<48x36xi1>, vector<48x36xf32>
    %c0_8 = arith.constant 0 : index
    %c0_9 = arith.constant 0 : index
    %13 = vector.load %arg3[%c0_8, %c0_9] : memref<36x96xf32, #tpu.memory_space<vmem>>, vector<36x96xf32>
    %cst_10 = arith.constant dense<0.000000e+00> : vector<48x96xf32>
    %14 = tpu.matmul %12, %13, %cst_10 {dimension_numbers = #tpu.dot_dimension_numbers<[1], [0], [0], [1], [0, 0, 1, 1], [], []>} : vector<48x36xf32>, vector<36x96xf32>, vector<48x96xf32> -> vector<48x96xf32>
    %c1 = arith.constant 1 : index
    %c0_11 = arith.constant 0 : index
    %15 = vector.load %arg11[%c1, %c0_11] : memref<13x144xf32, #tpu.memory_space<vmem>>, vector<1x96xf32>
    %16 = vector.broadcast %15 : vector<1x96xf32> to vector<48x96xf32>
    %17 = arith.addf %14, %16 : vector<48x96xf32>
    %18 = tpu.iota {dimensions = array<i32: 0>} : vector<48x96xi32>
    %19 = tpu.iota {dimensions = array<i32: 1>} : vector<48x96xi32>
    %c0_i32 = arith.constant 0 : i32
    %20 = vector.broadcast %c0_i32 : i32 to vector<48x96xi32>
    %c24_i32 = arith.constant 24 : i32
    %21 = vector.broadcast %c24_i32 : i32 to vector<48x96xi32>
    %22 = arith.cmpi sge, %18, %21 : vector<48x96xi32>
    %c1_i32 = arith.constant 1 : i32
    %c0_i32_12 = arith.constant 0 : i32
    %23 = vector.broadcast %c1_i32 : i32 to vector<48x96xi32>
    %24 = vector.broadcast %c0_i32_12 : i32 to vector<48x96xi32>
    %25 = arith.select %22, %23, %24 : vector<48x96xi1>, vector<48x96xi32>
    %26 = arith.addi %20, %25 : vector<48x96xi32>
    %c24_i32_13 = arith.constant 24 : i32
    %27 = vector.broadcast %c24_i32_13 : i32 to vector<48x96xi32>
    %28 = arith.muli %27, %26 : vector<48x96xi32>
    %29 = arith.subi %18, %28 : vector<48x96xi32>
    %c4_i32 = arith.constant 4 : i32
    %30 = vector.broadcast %c4_i32 : i32 to vector<48x96xi32>
    %31 = arith.muli %29, %30 : vector<48x96xi32>
    %32 = arith.cmpi sge, %19, %31 : vector<48x96xi32>
    %c4_i32_14 = arith.constant 4 : i32
    %33 = vector.broadcast %c4_i32_14 : i32 to vector<48x96xi32>
    %34 = arith.addi %31, %33 : vector<48x96xi32>
    %35 = arith.cmpi slt, %19, %34 : vector<48x96xi32>
    %36 = arith.andi %32, %35 : vector<48x96xi1>
    %cst_15 = arith.constant 0.000000e+00 : f32
    %37 = vector.broadcast %cst_15 : f32 to vector<48x96xf32>
    %38 = arith.select %36, %17, %37 : vector<48x96xi1>, vector<48x96xf32>
    %39 = tpu.iota {dimensions = array<i32: 0>} : vector<2x48xi32>
    %40 = tpu.iota {dimensions = array<i32: 1>} : vector<2x48xi32>
    %c0_i32_16 = arith.constant 0 : i32
    %41 = vector.broadcast %c0_i32_16 : i32 to vector<2x48xi32>
    %c24_i32_17 = arith.constant 24 : i32
    %42 = vector.broadcast %c24_i32_17 : i32 to vector<2x48xi32>
    %43 = arith.cmpi sge, %40, %42 : vector<2x48xi32>
    %c1_i32_18 = arith.constant 1 : i32
    %c0_i32_19 = arith.constant 0 : i32
    %44 = vector.broadcast %c1_i32_18 : i32 to vector<2x48xi32>
    %45 = vector.broadcast %c0_i32_19 : i32 to vector<2x48xi32>
    %46 = arith.select %43, %44, %45 : vector<2x48xi1>, vector<2x48xi32>
    %47 = arith.addi %41, %46 : vector<2x48xi32>
    %48 = arith.cmpi eq, %47, %39 : vector<2x48xi32>
    %cst_20 = arith.constant 1.000000e+00 : f32
    %cst_21 = arith.constant 0.000000e+00 : f32
    %49 = vector.broadcast %cst_20 : f32 to vector<2x48xf32>
    %50 = vector.broadcast %cst_21 : f32 to vector<2x48xf32>
    %51 = arith.select %48, %49, %50 : vector<2x48xi1>, vector<2x48xf32>
    %cst_22 = arith.constant dense<0.000000e+00> : vector<2x96xf32>
    %52 = tpu.matmul %51, %38, %cst_22 {dimension_numbers = #tpu.dot_dimension_numbers<[1], [0], [0], [1], [0, 0, 1, 1], [], []>} : vector<2x48xf32>, vector<48x96xf32>, vector<2x96xf32> -> vector<2x96xf32>
    %53 = tpu.iota {dimensions = array<i32: 1>} : vector<2x64xi32>
    %c32_i32_23 = arith.constant 32 : i32
    %54 = vector.broadcast %c32_i32_23 : i32 to vector<2x64xi32>
    %55 = arith.cmpi slt, %53, %54 : vector<2x64xi32>
    %c0_24 = arith.constant 0 : index
    %c0_25 = arith.constant 0 : index
    %56 = vector.load %arg4[%c0_24, %c0_25] : memref<68x64xf32, #tpu.memory_space<vmem>>, vector<68x64xf32>
    %cst_26 = arith.constant dense<0.000000e+00> : vector<2x64xf32>
    %57 = tpu.matmul %1, %56, %cst_26 {dimension_numbers = #tpu.dot_dimension_numbers<[1], [0], [0], [1], [0, 0, 1, 1], [], []>} : vector<2x68xf32>, vector<68x64xf32>, vector<2x64xf32> -> vector<2x64xf32>
    %c0_27 = arith.constant 0 : index
    %c0_28 = arith.constant 0 : index
    %58 = vector.load %arg5[%c0_27, %c0_28] : memref<96x64xf32, #tpu.memory_space<vmem>>, vector<96x64xf32>
    %cst_29 = arith.constant dense<0.000000e+00> : vector<2x64xf32>
    %59 = tpu.matmul %52, %58, %cst_29 {dimension_numbers = #tpu.dot_dimension_numbers<[1], [0], [0], [1], [0, 0, 1, 1], [], []>} : vector<2x96xf32>, vector<96x64xf32>, vector<2x64xf32> -> vector<2x64xf32>
    %60 = arith.addf %57, %59 : vector<2x64xf32>
    %c2 = arith.constant 2 : index
    %c0_30 = arith.constant 0 : index
    %61 = vector.load %arg11[%c2, %c0_30] : memref<13x144xf32, #tpu.memory_space<vmem>>, vector<1x64xf32>
    %62 = vector.broadcast %61 : vector<1x64xf32> to vector<2x64xf32>
    %63 = arith.addf %60, %62 : vector<2x64xf32>
    %cst_31 = arith.constant 0.000000e+00 : f32
    %64 = vector.broadcast %cst_31 : f32 to vector<2x64xf32>
    %65 = arith.maximumf %63, %64 : vector<2x64xf32>
    %66 = arith.select %55, %65, %63 : vector<2x64xi1>, vector<2x64xf32>
    %c0_32 = arith.constant 0 : index
    %c0_33 = arith.constant 0 : index
    %c0_34 = arith.constant 0 : index
    %67 = vector.load %arg7[%c0_32, %c0_33, %c0_34] : memref<4x64x32xf32, #tpu.memory_space<vmem>>, vector<1x64x32xf32>
    %68 = vector.shape_cast %67 : vector<1x64x32xf32> to vector<64x32xf32>
    %cst_35 = arith.constant dense<0.000000e+00> : vector<2x32xf32>
    %69 = tpu.matmul %66, %68, %cst_35 {dimension_numbers = #tpu.dot_dimension_numbers<[1], [0], [0], [1], [0, 0, 1, 1], [], []>} : vector<2x64xf32>, vector<64x32xf32>, vector<2x32xf32> -> vector<2x32xf32>
    %c6 = arith.constant 6 : index
    %c0_36 = arith.constant 0 : index
    %70 = vector.load %arg11[%c6, %c0_36] : memref<13x144xf32, #tpu.memory_space<vmem>>, vector<1x32xf32>
    %71 = vector.broadcast %70 : vector<1x32xf32> to vector<2x32xf32>
    %72 = arith.addf %69, %71 : vector<2x32xf32>
    %c0_37 = arith.constant 0 : index
    %c0_38 = arith.constant 0 : index
    %c0_39 = arith.constant 0 : index
    %73 = vector.load %arg6[%c0_37, %c0_38, %c0_39] : memref<3x32x64xf32, #tpu.memory_space<vmem>>, vector<1x32x64xf32>
    %74 = vector.shape_cast %73 : vector<1x32x64xf32> to vector<32x64xf32>
    %cst_40 = arith.constant dense<0.000000e+00> : vector<2x64xf32>
    %75 = tpu.matmul %72, %74, %cst_40 {dimension_numbers = #tpu.dot_dimension_numbers<[1], [0], [0], [1], [0, 0, 1, 1], [], []>} : vector<2x32xf32>, vector<32x64xf32>, vector<2x64xf32> -> vector<2x64xf32>
    %c3 = arith.constant 3 : index
    %c0_41 = arith.constant 0 : index
    %76 = vector.load %arg11[%c3, %c0_41] : memref<13x144xf32, #tpu.memory_space<vmem>>, vector<1x64xf32>
    %77 = vector.broadcast %76 : vector<1x64xf32> to vector<2x64xf32>
    %78 = arith.addf %75, %77 : vector<2x64xf32>
    %cst_42 = arith.constant 0.000000e+00 : f32
    %79 = vector.broadcast %cst_42 : f32 to vector<2x64xf32>
    %80 = arith.maximumf %78, %79 : vector<2x64xf32>
    %81 = arith.select %55, %80, %78 : vector<2x64xi1>, vector<2x64xf32>
    %c1_43 = arith.constant 1 : index
    %c0_44 = arith.constant 0 : index
    %c0_45 = arith.constant 0 : index
    %82 = vector.load %arg7[%c1_43, %c0_44, %c0_45] : memref<4x64x32xf32, #tpu.memory_space<vmem>>, vector<1x64x32xf32>
    %83 = vector.shape_cast %82 : vector<1x64x32xf32> to vector<64x32xf32>
    %cst_46 = arith.constant dense<0.000000e+00> : vector<2x32xf32>
    %84 = tpu.matmul %81, %83, %cst_46 {dimension_numbers = #tpu.dot_dimension_numbers<[1], [0], [0], [1], [0, 0, 1, 1], [], []>} : vector<2x64xf32>, vector<64x32xf32>, vector<2x32xf32> -> vector<2x32xf32>
    %c7 = arith.constant 7 : index
    %c0_47 = arith.constant 0 : index
    %85 = vector.load %arg11[%c7, %c0_47] : memref<13x144xf32, #tpu.memory_space<vmem>>, vector<1x32xf32>
    %86 = vector.broadcast %85 : vector<1x32xf32> to vector<2x32xf32>
    %87 = arith.addf %84, %86 : vector<2x32xf32>
    %c1_48 = arith.constant 1 : index
    %c0_49 = arith.constant 0 : index
    %c0_50 = arith.constant 0 : index
    %88 = vector.load %arg6[%c1_48, %c0_49, %c0_50] : memref<3x32x64xf32, #tpu.memory_space<vmem>>, vector<1x32x64xf32>
    %89 = vector.shape_cast %88 : vector<1x32x64xf32> to vector<32x64xf32>
    %cst_51 = arith.constant dense<0.000000e+00> : vector<2x64xf32>
    %90 = tpu.matmul %87, %89, %cst_51 {dimension_numbers = #tpu.dot_dimension_numbers<[1], [0], [0], [1], [0, 0, 1, 1], [], []>} : vector<2x32xf32>, vector<32x64xf32>, vector<2x64xf32> -> vector<2x64xf32>
    %c4 = arith.constant 4 : index
    %c0_52 = arith.constant 0 : index
    %91 = vector.load %arg11[%c4, %c0_52] : memref<13x144xf32, #tpu.memory_space<vmem>>, vector<1x64xf32>
    %92 = vector.broadcast %91 : vector<1x64xf32> to vector<2x64xf32>
    %93 = arith.addf %90, %92 : vector<2x64xf32>
    %cst_53 = arith.constant 0.000000e+00 : f32
    %94 = vector.broadcast %cst_53 : f32 to vector<2x64xf32>
    %95 = arith.maximumf %93, %94 : vector<2x64xf32>
    %96 = arith.select %55, %95, %93 : vector<2x64xi1>, vector<2x64xf32>
    %c2_54 = arith.constant 2 : index
    %c0_55 = arith.constant 0 : index
    %c0_56 = arith.constant 0 : index
    %97 = vector.load %arg7[%c2_54, %c0_55, %c0_56] : memref<4x64x32xf32, #tpu.memory_space<vmem>>, vector<1x64x32xf32>
    %98 = vector.shape_cast %97 : vector<1x64x32xf32> to vector<64x32xf32>
    %cst_57 = arith.constant dense<0.000000e+00> : vector<2x32xf32>
    %99 = tpu.matmul %96, %98, %cst_57 {dimension_numbers = #tpu.dot_dimension_numbers<[1], [0], [0], [1], [0, 0, 1, 1], [], []>} : vector<2x64xf32>, vector<64x32xf32>, vector<2x32xf32> -> vector<2x32xf32>
    %c8 = arith.constant 8 : index
    %c0_58 = arith.constant 0 : index
    %100 = vector.load %arg11[%c8, %c0_58] : memref<13x144xf32, #tpu.memory_space<vmem>>, vector<1x32xf32>
    %101 = vector.broadcast %100 : vector<1x32xf32> to vector<2x32xf32>
    %102 = arith.addf %99, %101 : vector<2x32xf32>
    %c2_59 = arith.constant 2 : index
    %c0_60 = arith.constant 0 : index
    %c0_61 = arith.constant 0 : index
    %103 = vector.load %arg6[%c2_59, %c0_60, %c0_61] : memref<3x32x64xf32, #tpu.memory_space<vmem>>, vector<1x32x64xf32>
    %104 = vector.shape_cast %103 : vector<1x32x64xf32> to vector<32x64xf32>
    %cst_62 = arith.constant dense<0.000000e+00> : vector<2x64xf32>
    %105 = tpu.matmul %102, %104, %cst_62 {dimension_numbers = #tpu.dot_dimension_numbers<[1], [0], [0], [1], [0, 0, 1, 1], [], []>} : vector<2x32xf32>, vector<32x64xf32>, vector<2x64xf32> -> vector<2x64xf32>
    %c5 = arith.constant 5 : index
    %c0_63 = arith.constant 0 : index
    %106 = vector.load %arg11[%c5, %c0_63] : memref<13x144xf32, #tpu.memory_space<vmem>>, vector<1x64xf32>
    %107 = vector.broadcast %106 : vector<1x64xf32> to vector<2x64xf32>
    %108 = arith.addf %105, %107 : vector<2x64xf32>
    %cst_64 = arith.constant 0.000000e+00 : f32
    %109 = vector.broadcast %cst_64 : f32 to vector<2x64xf32>
    %110 = arith.maximumf %108, %109 : vector<2x64xf32>
    %111 = arith.select %55, %110, %108 : vector<2x64xi1>, vector<2x64xf32>
    %c3_65 = arith.constant 3 : index
    %c0_66 = arith.constant 0 : index
    %c0_67 = arith.constant 0 : index
    %112 = vector.load %arg7[%c3_65, %c0_66, %c0_67] : memref<4x64x32xf32, #tpu.memory_space<vmem>>, vector<1x64x32xf32>
    %113 = vector.shape_cast %112 : vector<1x64x32xf32> to vector<64x32xf32>
    %cst_68 = arith.constant dense<0.000000e+00> : vector<2x32xf32>
    %114 = tpu.matmul %111, %113, %cst_68 {dimension_numbers = #tpu.dot_dimension_numbers<[1], [0], [0], [1], [0, 0, 1, 1], [], []>} : vector<2x64xf32>, vector<64x32xf32>, vector<2x32xf32> -> vector<2x32xf32>
    %c9 = arith.constant 9 : index
    %c0_69 = arith.constant 0 : index
    %115 = vector.load %arg11[%c9, %c0_69] : memref<13x144xf32, #tpu.memory_space<vmem>>, vector<1x32xf32>
    %116 = vector.broadcast %115 : vector<1x32xf32> to vector<2x32xf32>
    %117 = arith.addf %114, %116 : vector<2x32xf32>
    %118 = vector.extract_strided_slice %52 {offsets = [0, 64], sizes = [2, 32], strides = [1, 1]} : vector<2x96xf32> to vector<2x32xf32>
    %c0_70 = arith.constant 0 : index
    %c0_71 = arith.constant 0 : index
    %c0_72 = arith.constant 0 : index
    %119 = vector.load %arg8[%c0_70, %c0_71, %c0_72] : memref<2x32x144xf32, #tpu.memory_space<vmem>>, vector<1x32x144xf32>
    %120 = vector.shape_cast %119 : vector<1x32x144xf32> to vector<32x144xf32>
    %cst_73 = arith.constant dense<0.000000e+00> : vector<2x144xf32>
    %121 = tpu.matmul %117, %120, %cst_73 {dimension_numbers = #tpu.dot_dimension_numbers<[1], [0], [0], [1], [0, 0, 1, 1], [], []>} : vector<2x32xf32>, vector<32x144xf32>, vector<2x144xf32> -> vector<2x144xf32>
    %c1_74 = arith.constant 1 : index
    %c0_75 = arith.constant 0 : index
    %c0_76 = arith.constant 0 : index
    %122 = vector.load %arg8[%c1_74, %c0_75, %c0_76] : memref<2x32x144xf32, #tpu.memory_space<vmem>>, vector<1x32x144xf32>
    %123 = vector.shape_cast %122 : vector<1x32x144xf32> to vector<32x144xf32>
    %cst_77 = arith.constant dense<0.000000e+00> : vector<2x144xf32>
    %124 = tpu.matmul %118, %123, %cst_77 {dimension_numbers = #tpu.dot_dimension_numbers<[1], [0], [0], [1], [0, 0, 1, 1], [], []>} : vector<2x32xf32>, vector<32x144xf32>, vector<2x144xf32> -> vector<2x144xf32>
    %125 = arith.addf %121, %124 : vector<2x144xf32>
    %c10 = arith.constant 10 : index
    %c0_78 = arith.constant 0 : index
    %126 = vector.load %arg11[%c10, %c0_78] : memref<13x144xf32, #tpu.memory_space<vmem>>, vector<1x144xf32>
    %127 = vector.broadcast %126 : vector<1x144xf32> to vector<2x144xf32>
    %128 = arith.addf %125, %127 : vector<2x144xf32>
    %129 = tpu.iota {dimensions = array<i32: 1>} : vector<2x144xi32>
    %c128_i32 = arith.constant 128 : i32
    %130 = vector.broadcast %c128_i32 : i32 to vector<2x144xi32>
    %131 = arith.cmpi slt, %129, %130 : vector<2x144xi32>
    %cst_79 = arith.constant 0.000000e+00 : f32
    %132 = vector.broadcast %cst_79 : f32 to vector<2x144xf32>
    %133 = arith.maximumf %128, %132 : vector<2x144xf32>
    %134 = arith.select %131, %133, %128 : vector<2x144xi1>, vector<2x144xf32>
    %c0_80 = arith.constant 0 : index
    %c0_81 = arith.constant 0 : index
    %135 = vector.load %arg9[%c0_80, %c0_81] : memref<144x16xf32, #tpu.memory_space<vmem>>, vector<144x16xf32>
    %cst_82 = arith.constant dense<0.000000e+00> : vector<2x16xf32>
    %136 = tpu.matmul %134, %135, %cst_82 {dimension_numbers = #tpu.dot_dimension_numbers<[1], [0], [0], [1], [0, 0, 1, 1], [], []>} : vector<2x144xf32>, vector<144x16xf32>, vector<2x16xf32> -> vector<2x16xf32>
    %c11 = arith.constant 11 : index
    %c0_83 = arith.constant 0 : index
    %137 = vector.load %arg11[%c11, %c0_83] : memref<13x144xf32, #tpu.memory_space<vmem>>, vector<1x16xf32>
    %138 = vector.broadcast %137 : vector<1x16xf32> to vector<2x16xf32>
    %139 = arith.addf %136, %138 : vector<2x16xf32>
    %140 = vector.extract_strided_slice %1 {offsets = [0, 0], sizes = [2, 32], strides = [1, 1]} : vector<2x68xf32> to vector<2x32xf32>
    %c0_84 = arith.constant 0 : index
    %c0_85 = arith.constant 0 : index
    %141 = vector.load %arg10[%c0_84, %c0_85] : memref<32x16xf32, #tpu.memory_space<vmem>>, vector<32x16xf32>
    %cst_86 = arith.constant dense<0.000000e+00> : vector<2x16xf32>
    %142 = tpu.matmul %140, %141, %cst_86 {dimension_numbers = #tpu.dot_dimension_numbers<[1], [0], [0], [1], [0, 0, 1, 1], [], []>} : vector<2x32xf32>, vector<32x16xf32>, vector<2x16xf32> -> vector<2x16xf32>
    %c12 = arith.constant 12 : index
    %c0_87 = arith.constant 0 : index
    %143 = vector.load %arg11[%c12, %c0_87] : memref<13x144xf32, #tpu.memory_space<vmem>>, vector<1x16xf32>
    %144 = vector.broadcast %143 : vector<1x16xf32> to vector<2x16xf32>
    %145 = arith.addf %142, %144 : vector<2x16xf32>
    %146 = arith.addf %139, %145 : vector<2x16xf32>
    %cst_88 = arith.constant 0.000000e+00 : f32
    %147 = vector.broadcast %cst_88 : f32 to vector<2x112xf32>
    %148 = tpu.concatenate %146, %147 in 1 : vector<2x16xf32>, vector<2x112xf32> -> vector<2x128xf32>
    %c0_89 = arith.constant 0 : index
    %c0_90 = arith.constant 0 : index
    %149 = vector.load %arg12[%c0_89, %c0_90] : memref<2x128xf32, #tpu.memory_space<vmem>>, vector<2x128xf32>
    tpu.vector_store %arg12[%c0_89, %c0_90], %148 {strides = array<i32>} : memref<2x128xf32, #tpu.memory_space<vmem>>, vector<2x128xf32>,
    return
  }
}

</mosaic_0001>

<bundles_post_ra>
// kernel: _tide_forward_fused.1
= control target key start
LH: loop header
LB: loop body
LE: loop exit
PB: predicated region body
PF: predicated region fallthrough
CT: control target
= control target key end

     0   :  { %vm69_vm0 = vcmask 1042432   ;;  %vm50_vm1 = vcmask 23552   ;;  %vm208_vm2 = vcmask 1043456   ;;  %v168_v14 = vlaneseq  ;;  %s2144_s15 = smov 64   ;;  %s2782_s2 = inlined_call_operand.vmem [shape: f32[3,36], index: 2, kind: input, shape index: {}]   ;;  %s2783_s0 = inlined_call_operand.vmem [shape: f32[48,3], index: 0, kind: input, shape index: {}]   ;;  %s2784_s3 = inlined_call_operand.vmem [shape: f32[36,96], index: 3, kind: input, shape index: {}]   ;;  %s2785_s11 = inlined_call_operand.vmem [shape: f32[13,144], index: 11, kind: input, shape index: {}]   ;;  %s2786_s5 = inlined_call_operand.vmem [shape: f32[96,64], index: 5, kind: input, shape index: {}]   ;;  %s2787_s4 = inlined_call_operand.vmem [shape: f32[68,64], index: 4, kind: input, shape index: {}]   ;;  %s2788_s1 = inlined_call_operand.vmem [shape: f32[2,68], index: 1, kind: input, shape index: {}]   ;;  %s2789_s7 = inlined_call_operand.vmem [shape: f32[4,64,32], index: 7, kind: input, shape index: {}]   ;;  %s2790_s6 = inlined_call_operand.vmem [shape: f32[3,32,64], index: 6, kind: input, shape index: {}]   ;;  %s2791_s8 = inlined_call_operand.vmem [shape: f32[2,32,144], index: 8, kind: input, shape index: {}]   ;;  %s2792_s9 = inlined_call_operand.vmem [shape: f32[144,16], index: 9, kind: input, shape index: {}]   ;;  %s2793_s10 = inlined_call_operand.vmem [shape: f32[32,16], index: 10, kind: input, shape index: {}]   ;;  %s2794_s12 = inlined_call_operand.vmem [shape: f32[2,128], index: 12, kind: output, shape index: {}]  }
   0x1   :  { %v48_v0 = vld [vmem:[%s2782_s2] sm:$0x7]  ;;  %v42_v2 = vld [vmem:[%s2783_s0 + $0x8] sm:$0xff]  ;;  %v43_v3 = vld [vmem:[%s2783_s0 + $0x10] sm:$0xff]  ;;  %vm189_vm4 = vcmask 293888   ;;  %v2140_v41 = vmov 0.0|0.0  }
   0x2   :  { %v41_v1 = vld [vmem:[%s2783_s0] sm:$0xff]  ;;  %1751 = vmatprep.subr.msk.mxu0 %vm69_vm0, %v48_v0  ;;  %v184_v5 = vld [vmem:[%s2784_s3 + $0x8] sm:$0xff]  ;;  %v44_v7 = vld [vmem:[%s2783_s0 + $0x18] sm:$0xff]  ;;  %v2258_v16 = vand.u32 127, %v168_v14  ;;  %vm2141_vm5 = vmmov 0   ;;  %v2142_v42 = vmov 0.0  }
   0x3   :  { %1753 = vmatprep.mubr.msk.f32.mxu0 %vm50_vm1, %v41_v1  ;;  %1752 = vmatpush3.msk.msra.mxu0 %vm69_vm0, %v48_v0  ;;  %v183_v4 = vld [vmem:[%s2784_s3] sm:$0xff]  ;;  %v46_v9 = vld [vmem:[%s2783_s0 + $0x28] sm:$0xff]  ;;  %v185_v10 = vld [vmem:[%s2784_s3 + $0x10] sm:$0xff]  ;;  %v2328_v61 = vshrl.u32 %v168_v14, 7 }
   0x4   :  { %1754 = vmatmul.mubr.msk.f32.vlgmr.msra.gmra.mrb[0].mxu0 %vm50_vm1, %v42_v2  ;;  %v1964_v6 = vpack.c.bf16 %v184_v5, %v183_v4  ;;  %v45_v8 = vld [vmem:[%s2783_s0 + $0x20] sm:$0xff]  ;;  %v186_v11 = vld [vmem:[%s2784_s3 + $0x18] sm:$0xff]  ;;  %vm170_vm3 = vcmp.lt.s32.totalorder %v2258_v16, 32  ;;  %1972 = vmatprep.subr.bf16.mxu0 %v2140_v41  ;;  %v462_v44 = vld [vmem:[%s2786_s5 + $0x8] sm:$0xff] }
   0x5   :  { %1756 = vmatprep.mubr.msk.f32.mxu0 %vm50_vm1, %v43_v3  ;;  %v1968_v12 = vpack.c.bf16 %v186_v11, %v185_v10  ;;  %v187_v13 = vld [vmem:[%s2784_s3 + $0x20] sm:$0xf]  ;;  %v463_v45 = vld [vmem:[%s2786_s5 + $0x10] sm:$0xff]  ;;  %v464_v47 = vld [vmem:[%s2786_s5 + $0x18] sm:$0xff]  ;;  %v309_v62 = vadd.s32 8, %v2328_v61  ;;  %v311_v63 = vadd.s32 24, %v2328_v61 }
   0x6   :  { %1965 = vmatprep.subr.bf16.mxu1 %v1964_v6  ;;  %v49_v15 = vld [vmem:[%s2785_s11] ss:$0 sm:$0xff]  ;;  %v1988_v48 = vpack.c.bf16 %v464_v47, %v463_v45  ;;  %v466_v50 = vld [vmem:[%s2786_s5 + $0x28] sm:$0xff]  ;;  %v467_v52 = vld [vmem:[%s2786_s5 + $0x30] sm:$0xff]  ;;  %v338_v0 = vmul.u32 4, %v2328_v61  ;;  %v310_v2 = vadd.s32 16, %v2328_v61 }
   0x7   :  { %1967 = vmatpush3.bf16.msra.mxu1 %v1964_v6  ;;  %v461_v43 = vld [vmem:[%s2786_s5] sm:$0xff]  ;;  %v468_v53 = vld [vmem:[%s2786_s5 + $0x38] sm:$0xff]  ;;  %v470_v56 = vld [vmem:[%s2786_s5 + $0x48] sm:$0xff]  ;;  %v339_v1 = vmul.u32 4, %v309_v62  ;;  %v1582_v3 = vadd.s32 4294967272, %v311_v63  ;;  %v312_v4 = vadd.s32 32, %v2328_v61 }
   0x8   :  { %1757 = vmatmul.mubr.msk.f32.gmra.mrb[2].mxu0 %vm50_vm1, %v44_v7  ;;  %1969 = vmatprep.subr.bf16.mxu1 %v1968_v12  ;;  %v1985_v46 = vpack.c.bf16 %v462_v44, %v461_v43  ;;  %v465_v49 = vld [vmem:[%s2786_s5 + $0x20] sm:$0xff]  ;;  %v1994_v54 = vpack.c.bf16 %v468_v53, %v467_v52  ;;  %v471_v58 = vld [vmem:[%s2786_s5 + $0x50] sm:$0xff]  ;;  %v472_v59 = vld [vmem:[%s2786_s5 + $0x58] sm:$0xff]  ;;  %v313_v5 = vadd.s32 40, %v2328_v61  ;;  %v350_v6 = vadd.s32 4, %v338_v0 }
   0x9   :  { %1759 = vmatprep.mubr.msk.f32.mxu0 %vm50_vm1, %v45_v8  ;;  %v1991_v51 = vpack.c.bf16 %v466_v50, %v465_v49  ;;  %v469_v55 = vld [vmem:[%s2786_s5 + $0x40] sm:$0xff]  ;;  %v2000_v60 = vpack.c.bf16 %v472_v59, %v471_v58  ;;  %v351_v7 = vadd.s32 4, %v339_v1  ;;  %v340_v8 = vmul.u32 4, %v310_v2  ;;  %v453_v44 = vld [vmem:[%s2787_s4 + $0x8] sm:$0xff]  ;;  %v455_v49 = vld [vmem:[%s2787_s4 + $0x18] sm:$0xff] }
   0xa   :  { %v1997_v57 = vpack.c.bf16 %v470_v56, %v469_v55  ;;  %v1583_v10 = vadd.s32 4294967272, %v312_v4  ;;  %v1584_v11 = vadd.s32 4294967272, %v313_v5  ;;  %vm344_vm6 = vcmp.ge.s32.totalorder %v2258_v16, %v338_v0  ;;  %v452_v43 = vld [vmem:[%s2787_s4] sm:$0xff]  ;;  %v457_v52 = vld [vmem:[%s2787_s4 + $0x28] sm:$0xff]  ;;  %v459_v55 = vld [vmem:[%s2787_s4 + $0x38] sm:$0xff] }
   0xb   :  { %1971 = vmatpush3.bf16.msra.mxu1 %v1968_v12  ;;  %vm356_vm7 = vcmp.lt.s32.totalorder %v2258_v16, %v350_v6  ;;  %vm345_vm8 = vcmp.ge.s32.totalorder %v2258_v16, %v339_v1  ;;  %vm357_vm9 = vcmp.lt.s32.totalorder %v2258_v16, %v351_v7  ;;  %v352_v12 = vadd.s32 4, %v340_v8  ;;  %v2424_v58 = vld [vmem:[%s2788_s1] sm:$0x3]  ;;  %v630_v62 = vld [vmem:[%s2789_s7 + $0x10] sm:$0xff]  ;;  %v631_v0 = vld [vmem:[%s2789_s7 + $0x18] sm:$0xff] }
   0xc   :  { %1760 = vmatmul.mubr.msk.f32.gmra.mrb[4].mxu0 %vm50_vm1, %v46_v9  ;;  %1770 = vmatprep.subr.msk.mxu1 %vm208_vm2, %v187_v13  ;;  %v341_v9 = vmul.u32 4, %v1582_v3  ;;  %v342_v14 = vmul.u32 4, %v1583_v10  ;;  %vm2340_vm10 = vmand %vm344_vm6, %vm356_vm7  ;;  %vm346_vm12 = vcmp.ge.s32.totalorder %v2258_v16, %v340_v8  ;;  %v2003_v47 = vpack.c.bf16 %v453_v44, %v452_v43  ;;  %v628_v59 = vld [vmem:[%s2789_s7] sm:$0xff]  ;;  %v633_v5 = vld [vmem:[%s2789_s7 + $0x28] sm:$0xff] }
   0xd   :  { %1793 = vmatprep.mubr.msk.f32.mxu0 %vm2141_vm5, %v2142_v42  ;;  %vm2347_vm11 = vmand %vm345_vm8, %vm357_vm9  ;;  %vm358_vm13 = vcmp.lt.s32.totalorder %v2258_v16, %v352_v12  ;;  %v2018_v1 = vpack.c.bf16 %v631_v0, %v630_v62  ;;  %v632_v4 = vld [vmem:[%s2789_s7 + $0x20] sm:$0xff]  ;;  %v635_v10 = vld [vmem:[%s2789_s7 + $0x38] sm:$0xff] }
   0xe   :  { %vm347_vm14 = vcmp.ge.s32.totalorder %v2258_v16, %v341_v9  ;;  %vm1974_vm0 = vmpackc.low %vm2347_vm11, %vm2340_vm10  ;;  %vm348_vm6 = vcmp.ge.s32.totalorder %v2258_v16, %v342_v14  ;;  %vm374_vm10 = vcmp.ge.s32.totalorder %v2258_v16, 24  ;;  %v2021_v7 = vpack.c.bf16 %v633_v5, %v632_v4  ;;  %v711_v12 = vld [vmem:[%s2790_s6] sm:$0xff]  ;;  %v1616_v5 = vld [vmem:[%s2789_s7 + $0xa8] sm:$0xff] }
   0xf   :  { %1771 = vmatpush3.msk.msra.mxu1 %vm208_vm2, %v187_v13  ;;  %v353_v13 = vadd.s32 4, %v341_v9  ;;  %vm2359_vm1 = vmand %vm346_vm12, %vm358_vm13  ;;  %v634_v9 = vld [vmem:[%s2789_s7 + $0x30] sm:$0xff]  ;;  %v715_v44 = vld [vmem:[%s2785_s11 + $0x3] ss:$0 sm:$0xff] }
  0x10   :  { %1984 = vmatprep.subr.bf16.mxu1 %v2140_v41  ;;  %v1615_v4 = vld [vmem:[%s2789_s7 + $0xa0] sm:$0xff] }
  0x11   :  { %vm359_vm15 = vcmp.lt.s32.totalorder %v2258_v16, %v353_v13  ;;  %v712_v13 = vld [vmem:[%s2790_s6 + $0x8] sm:$0xff] }
  0xd7   :  { %v1755_v17 = vpop.f32.mrb[0].mxu0 }
  0xd8   :  { %v145_v18 = vadd.f32 %v1755_v17, %v49_v15  ;;  %v139_v19 = vpop.f32.mrb[1].mxu0  ;;  %v343_v17 = vmul.u32 4, %v1584_v11  ;;  %v2024_v11 = vpack.c.bf16 %v635_v10, %v634_v9  ;;  %v1635_v10 = vld [vmem:[%s2791_s8 + $0x48] sm:$0xff] }
  0xd9   :  { %v140_v20 = vadd.f32 %v139_v19, %v49_v15 }
  0xda   :  { %v172_v21 = vmax.f32 %v145_v18, 0.0  ;;  %vm349_vm7 = vcmp.ge.s32.totalorder %v2258_v16, %v343_v17 }
  0xdb   :  { %v171_v22 = vmax.f32 %v140_v20, 0.0  ;;  %v1758_v23 = vpop.f32.mrb[2].mxu0 }
  0xdc   :  { %v155_v24 = vadd.f32 %v1758_v23, %v49_v15  ;;  %v149_v25 = vpop.f32.mrb[3].mxu0  ;;  %v178_v29 = vsel %vm170_vm3, %v172_v21, %v145_v18  ;;  %v188_v18 = vld [vmem:[%s2785_s11 + $0x1] ss:$0 sm:$0xff]  ;;  %v354_v21 = vadd.s32 4, %v342_v14  ;;  %v2027_v14 = vpack.c.bf16 %v712_v13, %v711_v12 }
  0xdd   :  { %v150_v26 = vadd.f32 %v149_v25, %v49_v15  ;;  %v177_v27 = vsel %vm170_vm3, %v171_v22, %v140_v20  ;;  %v1620_v13 = vld [vmem:[%s2790_s6 + $0x40] sm:$0xff] }
  0xde   :  { %v174_v28 = vmax.f32 %v155_v24, 0.0  ;;  %1772 = vmatprep.mubr.msk.f32.mxu1 %vm189_vm4, %v177_v27  ;;  %vm360_vm8 = vcmp.lt.s32.totalorder %v2258_v16, %v354_v21  ;;  %v1598_v27 = vld [vmem:[%s2789_s7 + $0x48] sm:$0xff] }
  0xdf   :  { %v173_v30 = vmax.f32 %v150_v26, 0.0  ;;  %v1761_v31 = vpop.f32.mrb[4].mxu0  ;;  %1773 = vmatmul.mubr.msk.f32.vlgmr.msra.gmra.mrb[0].mxu1 %vm189_vm4, %v178_v29  ;;  %vm2377_vm12 = vmand %vm348_vm6, %vm360_vm8  ;;  %vm716_vm6 = vcmask 261120  }
  0xe0   :  { %v165_v32 = vadd.f32 %v1761_v31, %v49_v15  ;;  %v159_v33 = vpop.f32.mrb[5].mxu0  ;;  %v180_v37 = vsel %vm170_vm3, %v174_v28, %v155_v24  ;;  %1986 = vmatpush3.bf16.msra.mxu1 %v1985_v46  ;;  %v355_v24 = vadd.s32 4, %v343_v17  ;;  %v624_v17 = vld [vmem:[%s2785_s11 + $0x2] ss:$0 sm:$0xff] }
  0xe1   :  { %v160_v34 = vadd.f32 %v159_v33, %v49_v15  ;;  %v179_v35 = vsel %vm170_vm3, %v173_v30, %v150_v26  ;;  %1987 = vmatprep.subr.bf16.mxu1 %v2140_v41  ;;  %v1597_v26 = vld [vmem:[%s2789_s7 + $0x40] sm:$0xff]  ;;  %v1602_v33 = vld [vmem:[%s2789_s7 + $0x68] sm:$0xff] }
  0xe2   :  { %v176_v36 = vmax.f32 %v165_v32, 0.0  ;;  %1775 = vmatprep.mubr.msk.f32.mxu1 %vm189_vm4, %v179_v35  ;;  %vm361_vm9 = vcmp.lt.s32.totalorder %v2258_v16, %v355_v24  ;;  %v714_v24 = vld [vmem:[%s2790_s6 + $0x18] sm:$0xff]  ;;  %v1392_v16 = vld [vmem:[%s2792_s9 + $0x8] sm:$0xff] }
  0xe3   :  { %v175_v38 = vmax.f32 %v160_v34, 0.0  ;;  %1776 = vmatmul.mubr.msk.f32.gmra.mrb[2].mxu1 %vm189_vm4, %v180_v37  ;;  %vm367_vm13 = vmand %vm349_vm7, %vm361_vm9 }
  0xe4   :  { %v182_v40 = vsel %vm170_vm3, %v176_v36, %v165_v32  ;;  %1989 = vmatpush3.bf16.msra.mxu1 %v1988_v48  ;;  %v2143_v36 = vmov 0   ;;  %v454_v48 = vld [vmem:[%s2787_s4 + $0x10] sm:$0xff] }
  0xe5   :  { %v181_v39 = vsel %vm170_vm3, %v175_v38, %v160_v34  ;;  %1990 = vmatprep.subr.bf16.mxu1 %v2140_v41  ;;  %v375_v37 = vsel %vm374_vm10, 1, %v2143_v36  ;;  %v2006_v50 = vpack.c.bf16 %v455_v49, %v454_v48 }
  0xe6   :  { %1778 = vmatprep.mubr.msk.f32.mxu1 %vm189_vm4, %v181_v39 }
  0xe7   :  { %1779 = vmatmul.mubr.msk.f32.gmra.mrb[4].mxu1 %vm189_vm4, %v182_v40  ;;  %vm2363_vm4 = vmand %vm347_vm14, %vm359_vm15  ;;  %vm376_vm15 = vcmp.eq.s32.totalorder %v375_v37, %v2328_v61 }
  0xe8   :  { %1820 = vmatprep.mubr.msk.f32.mxu1 %vm2141_vm5, %v2142_v42  ;;  %1992 = vmatpush3.bf16.msra.mxu1 %v1991_v51  ;;  %vm1978_vm11 = vmpackc.low %vm2363_vm4, %vm2359_vm1  ;;  %v377_v46 = vsel %vm376_vm15, 1.0, %v2142_v42  ;;  %v456_v51 = vld [vmem:[%s2787_s4 + $0x20] sm:$0xff]  ;;  %vm547_vm1 = vcmask 556032   ;;  %vm637_vm4 = vcmask 523264  }
  0xe9   :  { %1993 = vmatprep.subr.bf16.mxu1 %v2140_v41  ;;  %vm1982_vm14 = vmpackc.low %vm367_vm13, %vm2377_vm12  ;;  %v2009_v53 = vpack.c.bf16 %v457_v52, %v456_v51 }
  0xec   :  { %1995 = vmatpush3.bf16.msra.mxu1 %v1994_v54  ;;  %v458_v54 = vld [vmem:[%s2787_s4 + $0x30] sm:$0xff] }
  0xed   :  { %1996 = vmatprep.subr.bf16.mxu1 %v2140_v41  ;;  %v2012_v56 = vpack.c.bf16 %v459_v55, %v458_v54  ;;  %v1609_v54 = vld [vmem:[%s2790_s6 + $0x38] sm:$0xff] }
  0xf0   :  { %1998 = vmatpush3.bf16.msra.mxu1 %v1997_v57  ;;  %v460_v57 = vld [vmem:[%s2787_s4 + $0x40] sm:$0xf] }
  0xf1   :  { %1999 = vmatprep.subr.bf16.mxu1 %v2140_v41 }
  0xf4   :  { %2001 = vmatpush3.bf16.msra.mxu1 %v2000_v60  ;;  %v629_v60 = vld [vmem:[%s2789_s7 + $0x8] sm:$0xff] }
  0xf5   :  { %2026 = vmatprep.subr.bf16.mxu1 %v2140_v41  ;;  %v2015_v63 = vpack.c.bf16 %v629_v60, %v628_v59  ;;  %v801_v59 = vld [vmem:[%s2785_s11 + $0x7] ss:$0 sm:$0xff] }
 0x1b2   :  { %v1774_v20 = vpop.f32.mrb[0].mxu1 }
 0x1b3   :  { %v284_v22 = vadd.f32 %v1774_v20, %v188_v18  ;;  %v278_v23 = vpop.f32.mrb[1].mxu1 }
 0x1b4   :  { %v279_v25 = vadd.f32 %v278_v23, %v188_v18  ;;  %v713_v23 = vld [vmem:[%s2790_s6 + $0x10] sm:$0xff] }
 0x1b6   :  { %v1973_v28 = vpack.c.bf16 %v284_v22, %v279_v25  ;;  %v1777_v29 = vpop.f32.mrb[2].mxu1  ;;  %v2030_v25 = vpack.c.bf16 %v714_v24, %v713_v23  ;;  %v1639_v23 = vld [vmem:[%s2791_s8 + $0x68] sm:$0xff]  ;;  %v1641_v24 = vld [vmem:[%s2791_s8 + $0x78] sm:$0xff] }
 0x1b7   :  { %v294_v30 = vadd.f32 %v1777_v29, %v188_v18  ;;  %v288_v31 = vpop.f32.mrb[3].mxu1  ;;  %v2033_v29 = vpack.c.bf16 %v1598_v27, %v1597_v26  ;;  %v2084_v27 = vpack.c.bf16 %v1641_v24, %v1639_v23  ;;  %v1400_v23 = vld [vmem:[%s2792_s9 + $0x48] sm:$0xff] }
 0x1b8   :  { %v289_v32 = vadd.f32 %v288_v31, %v188_v18  ;;  %1975 = vmatpush3.bf16.msk.msra.mxu0 %vm1974_vm0, %v1973_v28  ;;  %vm378_vm0 = vcmask 392192   ;;  %v1599_v28 = vld [vmem:[%s2789_s7 + $0x50] sm:$0xff] }
 0x1b9   :  { %1976 = vmatprep.subr.bf16.mxu0 %v2140_v41 }
 0x1ba   :  { %v1977_v34 = vpack.c.bf16 %v294_v30, %v289_v32  ;;  %v1780_v35 = vpop.f32.mrb[4].mxu1  ;;  %v1600_v30 = vld [vmem:[%s2789_s7 + $0x58] sm:$0xff]  ;;  %v1601_v32 = vld [vmem:[%s2789_s7 + $0x60] sm:$0xff] }
 0x1bb   :  { %v304_v38 = vadd.f32 %v1780_v35, %v188_v18  ;;  %v298_v39 = vpop.f32.mrb[5].mxu1  ;;  %v2036_v31 = vpack.c.bf16 %v1600_v30, %v1599_v28  ;;  %v636_v35 = vld [vmem:[%s2785_s11 + $0x6] ss:$0 sm:$0xff] }
 0x1bc   :  { %v299_v40 = vadd.f32 %v298_v39, %v188_v18  ;;  %1979 = vmatpush3.bf16.msk.msra.mxu0 %vm1978_vm11, %v1977_v34  ;;  %v2039_v34 = vpack.c.bf16 %v1602_v33, %v1601_v32  ;;  %v1603_v39 = vld [vmem:[%s2789_s7 + $0x70] sm:$0xff]  ;;  %v1638_v28 = vld [vmem:[%s2791_s8 + $0x60] sm:$0xff] }
 0x1bd   :  { %1980 = vmatprep.subr.bf16.mxu0 %v2140_v41  ;;  %v1622_v33 = vld [vmem:[%s2790_s6 + $0x50] sm:$0xff] }
 0x1be   :  { %v1981_v45 = vpack.c.bf16 %v304_v38, %v299_v40  ;;  %v1604_v40 = vld [vmem:[%s2789_s7 + $0x78] sm:$0xff] }
 0x1bf   :  { %v2042_v43 = vpack.c.bf16 %v1604_v40, %v1603_v39 }
 0x1c0   :  { %1983 = vmatpush3.bf16.msk.msra.mxu0 %vm1982_vm14, %v1981_v45 }
 0x1c1   :  { %2002 = vmatprep.subr.bf16.mxu0 %v2140_v41 }
 0x1c3   :  { %1794 = vmatmul.mubr.msk.f32.vlgmr.msra.gmra.mrb[6].mxu0 %vm378_vm0, %v377_v46  ;;  %v1606_v46 = vld [vmem:[%s2790_s6 + $0x20] sm:$0xff] }
 0x1c4   :  { %2004 = vmatpush3.bf16.msra.mxu0 %v2003_v47  ;;  %1841 = vmatprep.mubr.msk.f32.mxu0 %vm2141_vm5, %v2142_v42  ;;  %v1607_v47 = vld [vmem:[%s2790_s6 + $0x28] sm:$0xff] }
 0x1c5   :  { %2005 = vmatprep.subr.bf16.mxu0 %v2140_v41  ;;  %v2045_v51 = vpack.c.bf16 %v1607_v47, %v1606_v46  ;;  %v1628_v46 = vld [vmem:[%s2789_s7 + $0xd8] sm:$0xff] }
 0x1c8   :  { %2007 = vmatpush3.bf16.msra.mxu0 %v2006_v50 }
 0x1c9   :  { %2008 = vmatprep.subr.bf16.mxu0 %v2140_v41 }
 0x1cc   :  { %2010 = vmatpush3.bf16.msra.mxu0 %v2009_v53  ;;  %v1608_v53 = vld [vmem:[%s2790_s6 + $0x30] sm:$0xff] }
 0x1cd   :  { %2011 = vmatprep.subr.bf16.mxu0 %v2140_v41  ;;  %v2048_v55 = vpack.c.bf16 %v1609_v54, %v1608_v53  ;;  %v1204_v54 = vld [vmem:[%s2791_s8 + $0x8] sm:$0xff] }
 0x1d0   :  { %2013 = vmatpush3.bf16.msra.mxu0 %v2012_v56  ;;  %v1611_v56 = vld [vmem:[%s2789_s7 + $0x80] sm:$0xff] }
 0x1d1   :  { %1839 = vmatprep.subr.mxu0 %v2142_v42 }
 0x1d4   :  { %1840 = vmatpush3.msk.msra.mxu0 %vm208_vm2, %v460_v57  ;;  %vm473_vm2 = vcmask 785408   ;;  %v1612_v57 = vld [vmem:[%s2789_s7 + $0x88] sm:$0xff] }
 0x1d5   :  { %1842 = vmatmul.mubr.msk.f32.vlgmr.msra.gmra.mrb[8].mxu0 %vm547_vm1, %v2424_v58  ;;  %2014 = vmatprep.subr.bf16.mxu0 %v2140_v41  ;;  %v2051_v62 = vpack.c.bf16 %v1612_v57, %v1611_v56  ;;  %v1203_v56 = vld [vmem:[%s2791_s8] sm:$0xff] }
 0x1d6   :  { %1860 = vmatprep.mubr.msk.f32.mxu0 %vm2141_vm5, %v2142_v42  ;;  %2016 = vmatpush3.bf16.msra.mxu0 %v2015_v63 }
 0x1d7   :  { %2017 = vmatprep.subr.bf16.mxu0 %v2140_v41 }
 0x1da   :  { %2019 = vmatpush3.bf16.msra.mxu0 %v2018_v1  ;;  %v1613_v1 = vld [vmem:[%s2789_s7 + $0x90] sm:$0xff] }
 0x1db   :  { %2020 = vmatprep.subr.bf16.mxu0 %v2140_v41 }
 0x1de   :  { %2022 = vmatpush3.bf16.msra.mxu0 %v2021_v7  ;;  %v1617_v7 = vld [vmem:[%s2789_s7 + $0xb0] sm:$0xff] }
 0x1df   :  { %2023 = vmatprep.subr.bf16.mxu0 %v2140_v41 }
 0x1e2   :  { %2025 = vmatpush3.bf16.msra.mxu0 %v2024_v11  ;;  %v1637_v11 = vld [vmem:[%s2791_s8 + $0x58] sm:$0xff] }
 0x1e3   :  { %2032 = vmatprep.subr.bf16.mxu0 %v2140_v41  ;;  %v2080_v12 = vpack.c.bf16 %v1637_v11, %v1635_v10  ;;  %v1391_v10 = vld [vmem:[%s2792_s9] sm:$0xff]  ;;  %v1393_v11 = vld [vmem:[%s2792_s9 + $0x10] sm:$0xff] }
 0x296   :  { %v448_v2 = vpop.f32.mrb[6].mxu0 }
 0x297   :  { %v1795_v3 = vpop.f32.mrb[7].mxu0  ;;  %1821 = vmatmul.mubr.msk.f32.vlgmr.msra.gmra.mrb[6].mxu1 %vm473_vm2, %v448_v2  ;;  %1220 = vrot.lane.b32.xlu0 %v448_v2, %s2144_s15  ;;  %v1614_v2 = vld [vmem:[%s2789_s7 + $0x98] sm:$0xff] }
 0x298   :  { %1871 = vmatprep.mubr.msk.f32.mxu1 %vm2141_vm5, %v2142_v42  ;;  %2028 = vmatpush3.bf16.msra.mxu1 %v2027_v14  ;;  %v2054_v3 = vpack.c.bf16 %v1614_v2, %v1613_v1  ;;  %v1621_v14 = vld [vmem:[%s2790_s6 + $0x48] sm:$0xff]  ;;  %v1044_v1 = vld [vmem:[%s2785_s11 + $0x5] ss:$0 sm:$0xff] }
 0x299   :  { %2029 = vmatprep.subr.bf16.mxu1 %v2140_v41 }
 0x29c   :  { %2031 = vmatpush3.bf16.msra.mxu1 %v2030_v25 }
 0x29d   :  { %2062 = vmatprep.subr.bf16.mxu1 %v2140_v41 }
 0x2a8   :  { %v620_v6 = vpop.f32.mrb[8].mxu0 }
 0x2a9   :  { %v1843_v8 = vpop.f32.mrb[9].mxu0 }
 0x2aa   :  { %v1618_v8 = vld [vmem:[%s2789_s7 + $0xb8] sm:$0xff] }
 0x2ab   :  { %v2060_v9 = vpack.c.bf16 %v1618_v8, %v1617_v7  ;;  %v1207_v7 = vld [vmem:[%s2791_s8 + $0x20] sm:$0xff]  ;;  %v1209_v8 = vld [vmem:[%s2791_s8 + $0x30] sm:$0xff] }
 0x309   :  { %v1221_v32 = vpop.permute.xlu0 %1220 }
 0x36a   :  { %v543_v15 = vpop.f32.mrb[6].mxu1 }
 0x36b   :  { %v621_v18 = vadd.f32 %v620_v6, %v543_v15  ;;  %v1822_v19 = vpop.f32.mrb[7].mxu1  ;;  %v2057_v6 = vpack.c.bf16 %v1616_v5, %v1615_v4  ;;  %v2063_v15 = vpack.c.bf16 %v1621_v14, %v1620_v13  ;;  %v1394_v13 = vld [vmem:[%s2792_s9 + $0x18] sm:$0xff] }
 0x36c   :  { %v1634_v19 = vld [vmem:[%s2791_s8 + $0x40] sm:$0xff]  ;;  %v2100_v14 = vpack.c.bf16 %v1394_v13, %v1393_v11 }
 0x36d   :  { %v625_v20 = vadd.f32 %v624_v17, %v621_v18  ;;  %v880_v17 = vld [vmem:[%s2785_s11 + $0x4] ss:$0 sm:$0xff] }
 0x36f   :  { %v626_v21 = vmax.f32 %v625_v20, 0.0 }
 0x371   :  { %v627_v22 = vsel %vm170_vm3, %v626_v21, %v625_v20  ;;  %v1636_v20 = vld [vmem:[%s2791_s8 + $0x50] sm:$0xff] }
 0x372   :  { %1861 = vmatmul.mubr.msk.f32.vlgmr.msra.gmra.mrb[10].mxu0 %vm637_vm4, %v627_v22  ;;  %v2082_v26 = vpack.c.bf16 %v1636_v20, %v1634_v19  ;;  %v1397_v19 = vld [vmem:[%s2792_s9 + $0x30] sm:$0xff]  ;;  %v1398_v20 = vld [vmem:[%s2792_s9 + $0x38] sm:$0xff] }
 0x373   :  { %1890 = vmatprep.mubr.msk.f32.mxu0 %vm2141_vm5, %v2142_v42  ;;  %2034 = vmatpush3.bf16.msra.mxu0 %v2033_v29  ;;  %v1640_v29 = vld [vmem:[%s2791_s8 + $0x70] sm:$0xff] }
 0x374   :  { %2035 = vmatprep.subr.bf16.mxu0 %v2140_v41 }
 0x377   :  { %2037 = vmatpush3.bf16.msra.mxu0 %v2036_v31  ;;  %v2086_v31 = vpack.c.bf16 %v1640_v29, %v1638_v28  ;;  %v1403_v28 = vld [vmem:[%s2792_s9 + $0x60] sm:$0xff]  ;;  %v1404_v29 = vld [vmem:[%s2792_s9 + $0x68] sm:$0xff] }
 0x378   :  { %2038 = vmatprep.subr.bf16.mxu0 %v2140_v41 }
 0x37b   :  { %2040 = vmatpush3.bf16.msra.mxu0 %v2039_v34  ;;  %v1623_v34 = vld [vmem:[%s2790_s6 + $0x58] sm:$0xff] }
 0x37c   :  { %2041 = vmatprep.subr.bf16.mxu0 %v2140_v41 }
 0x37f   :  { %2043 = vmatpush3.bf16.msra.mxu0 %v2042_v43 }
 0x380   :  { %2044 = vmatprep.subr.bf16.mxu0 %v2140_v41 }
 0x445   :  { %v707_v36 = vpop.f32.mrb[10].mxu0 }
 0x446   :  { %v708_v37 = vadd.f32 %v707_v36, %v636_v35  ;;  %v1862_v38 = vpop.f32.mrb[11].mxu0  ;;  %v2066_v35 = vpack.c.bf16 %v1623_v34, %v1622_v33  ;;  %v1625_v36 = vld [vmem:[%s2789_s7 + $0xc0] sm:$0xff]  ;;  %v1129_v34 = vld [vmem:[%s2785_s11 + $0x11] ss:$0 sm:$0xff] }
 0x447   :  { %v965_v38 = vld [vmem:[%s2785_s11 + $0x10] ss:$0 sm:$0xff] }
 0x448   :  { %1872 = vmatmul.mubr.msk.f32.vlgmr.msra.gmra.mrb[8].mxu1 %vm716_vm6, %v708_v37  ;;  %v1626_v37 = vld [vmem:[%s2789_s7 + $0xc8] sm:$0xff] }
 0x449   :  { %1931 = vmatprep.mubr.msk.f32.mxu1 %vm2141_vm5, %v2142_v42  ;;  %2064 = vmatpush3.bf16.msra.mxu1 %v2063_v15  ;;  %v2069_v40 = vpack.c.bf16 %v1626_v37, %v1625_v36  ;;  %v1395_v15 = vld [vmem:[%s2792_s9 + $0x20] sm:$0xff] }
 0x44a   :  { %2065 = vmatprep.subr.bf16.mxu1 %v2140_v41 }
 0x44d   :  { %2067 = vmatpush3.bf16.msra.mxu1 %v2066_v35 }
 0x44e   :  { %2068 = vmatprep.subr.bf16.mxu1 %v2140_v41 }
 0x51b   :  { %v786_v45 = vpop.f32.mrb[8].mxu1 }
 0x51c   :  { %v787_v48 = vadd.f32 %v786_v45, %v715_v44  ;;  %v1873_v49 = vpop.f32.mrb[9].mxu1  ;;  %v1627_v45 = vld [vmem:[%s2789_s7 + $0xd0] sm:$0xff] }
 0x51d   :  { %v2072_v47 = vpack.c.bf16 %v1628_v46, %v1627_v45  ;;  %v1630_v49 = vld [vmem:[%s2789_s7 + $0xe8] sm:$0xff]  ;;  %v1378_v45 = vsub.s32 1, %v2328_v61 }
 0x51e   :  { %v790_v50 = vmax.f32 %v787_v48, 0.0 }
 0x520   :  { %v791_v52 = vsel %vm170_vm3, %v790_v50, %v787_v48  ;;  %v1629_v48 = vld [vmem:[%s2789_s7 + $0xe0] sm:$0xff] }
 0x521   :  { %1891 = vmatmul.mubr.msk.f32.vlgmr.msra.gmra.mrb[12].mxu0 %vm637_vm4, %v791_v52  ;;  %v2075_v50 = vpack.c.bf16 %v1630_v49, %v1629_v48  ;;  %v1632_v52 = vld [vmem:[%s2789_s7 + $0xf8] sm:$0xff]  ;;  %v1484_v48 = vld [vmem:[%s2793_s10] sm:$0xff]  ;;  %v1485_v49 = vld [vmem:[%s2793_s10 + $0x8] sm:$0xff] }
 0x522   :  { %2046 = vmatpush3.bf16.msra.mxu0 %v2045_v51  ;;  %1901 = vmatprep.mubr.msk.f32.mxu0 %vm2141_vm5, %v2142_v42  ;;  %v1631_v51 = vld [vmem:[%s2789_s7 + $0xf0] sm:$0xff] }
 0x523   :  { %2047 = vmatprep.subr.bf16.mxu0 %v2140_v41  ;;  %v2078_v53 = vpack.c.bf16 %v1632_v52, %v1631_v51 }
 0x526   :  { %2049 = vmatpush3.bf16.msra.mxu0 %v2048_v55  ;;  %v1206_v55 = vld [vmem:[%s2791_s8 + $0x18] sm:$0xff] }
 0x527   :  { %2050 = vmatprep.subr.bf16.mxu0 %v2140_v41  ;;  %v2088_v57 = vpack.c.bf16 %v1206_v55, %v1204_v54  ;;  %v2124_v54 = vpack.c.bf16 %v1485_v49, %v1484_v48 }
 0x5f4   :  { %v871_v60 = vpop.f32.mrb[12].mxu0 }
 0x5f5   :  { %v872_v63 = vadd.f32 %v871_v60, %v801_v59  ;;  %v1892_v0 = vpop.f32.mrb[13].mxu0  ;;  %v1205_v59 = vld [vmem:[%s2791_s8 + $0x10] sm:$0xff]  ;;  %v1208_v60 = vld [vmem:[%s2791_s8 + $0x28] sm:$0xff] }
 0x5f7   :  { %1902 = vmatmul.mubr.msk.f32.vlgmr.msra.gmra.mrb[14].mxu0 %vm716_vm6, %v872_v63  ;;  %v2090_v63 = vpack.c.bf16 %v1205_v59, %v1203_v56  ;;  %v1487_v56 = vld [vmem:[%s2793_s10 + $0x18] sm:$0xff]  ;;  %v1409_v59 = vld [vmem:[%s2785_s11 + $0x13] ss:$0 sm:$0xff] }
 0x5f8   :  { %2052 = vmatpush3.bf16.msra.mxu0 %v2051_v62  ;;  %1920 = vmatprep.mubr.msk.f32.mxu0 %vm2141_vm5, %v2142_v42  ;;  %v1210_v62 = vld [vmem:[%s2791_s8 + $0x38] sm:$0xff] }
 0x5f9   :  { %2053 = vmatprep.subr.bf16.mxu0 %v2140_v41  ;;  %v2092_v0 = vpack.c.bf16 %v1210_v62, %v1208_v60  ;;  %v1488_v60 = vld [vmem:[%s2785_s11 + $0x14] ss:$0 sm:$0xff] }
 0x5fa   :  { %v2129_v62 = vadd.f32 %v1488_v60, %v1409_v59 }
 0x5fc   :  { %2055 = vmatpush3.bf16.msra.mxu0 %v2054_v3 }
 0x5fd   :  { %2056 = vmatprep.subr.bf16.mxu0 %v2140_v41 }
 0x600   :  { %2058 = vmatpush3.bf16.msra.mxu0 %v2057_v6 }
 0x601   :  { %2059 = vmatprep.subr.bf16.mxu0 %v2140_v41 }
 0x604   :  { %2061 = vmatpush3.bf16.msra.mxu0 %v2060_v9  ;;  %v2094_v9 = vpack.c.bf16 %v1209_v8, %v1207_v7 }
 0x605   :  { %2081 = vmatprep.subr.bf16.mxu0 %v2080_v12  ;;  %v2097_v12 = vpack.c.bf16 %v1392_v16, %v1391_v10 }
 0x6ca   :  { %v950_v18 = vpop.f32.mrb[14].mxu0 }
 0x6cb   :  { %v951_v21 = vadd.f32 %v950_v18, %v880_v17  ;;  %v1903_v22 = vpop.f32.mrb[15].mxu0  ;;  %v1396_v17 = vld [vmem:[%s2792_s9 + $0x28] sm:$0xff] }
 0x6cc   :  { %v2103_v18 = vpack.c.bf16 %v1396_v17, %v1395_v15  ;;  %v1399_v22 = vld [vmem:[%s2792_s9 + $0x40] sm:$0xff] }
 0x6cd   :  { %v954_v25 = vmax.f32 %v951_v21, 0.0  ;;  %v2109_v24 = vpack.c.bf16 %v1400_v23, %v1399_v22 }
 0x6cf   :  { %v955_v30 = vsel %vm170_vm3, %v954_v25, %v951_v21  ;;  %v2106_v21 = vpack.c.bf16 %v1398_v20, %v1397_v19  ;;  %v1401_v25 = vld [vmem:[%s2792_s9 + $0x50] sm:$0xff] }
 0x6d0   :  { %1921 = vmatmul.mubr.msk.f32.vlgmr.msra.gmra.mrb[16].mxu0 %vm637_vm4, %v955_v30  ;;  %v2115_v30 = vpack.c.bf16 %v1404_v29, %v1403_v28 }
 0x6d1   :  { %2083 = vmatpush1.bf16.msra.mxu0 %v2082_v26  ;;  %1288 = vmatprep.mubr.f32.mxu0 %v2142_v42  ;;  %v1402_v26 = vld [vmem:[%s2792_s9 + $0x58] sm:$0xff] }
 0x6d2   :  { %2085 = vmatprep.subr.bf16.mxu0 %v2084_v27  ;;  %v2112_v27 = vpack.c.bf16 %v1402_v26, %v1401_v25 }
 0x6d5   :  { %2087 = vmatpush1.bf16.msra.mxu0 %v2086_v31  ;;  %v1405_v31 = vld [vmem:[%s2792_s9 + $0x70] sm:$0xff] }
 0x6d6   :  { %2089 = vmatprep.subr.bf16.mxu0 %v2088_v57 }
 0x6d8   :  { %1642 = vmatmul.mubr.msk.f32.vlgmr.msra.gmra.mrb[18].mxu0 %vm716_vm6, %v1221_v32  ;;  %v1406_v32 = vld [vmem:[%s2792_s9 + $0x78] sm:$0xff] }
 0x6d9   :  { %1362 = vmatprep.mubr.f32.mxu0 %v2142_v42  ;;  %2091 = vmatpush1.bf16.msra.mxu0 %v2090_v63  ;;  %v2118_v33 = vpack.c.bf16 %v1406_v32, %v1405_v31 }
 0x6da   :  { %2093 = vmatprep.subr.bf16.mxu0 %v2092_v0 }
 0x6dd   :  { %2095 = vmatpush1.bf16.msra.mxu0 %v2094_v9 }
 0x7a3   :  { %v1035_v39 = vpop.f32.mrb[16].mxu0 }
 0x7a4   :  { %v1036_v43 = vadd.f32 %v1035_v39, %v965_v38  ;;  %v1922_v44 = vpop.f32.mrb[17].mxu0  ;;  %v1407_v38 = vld [vmem:[%s2792_s9 + $0x80] sm:$0xff]  ;;  %v1408_v39 = vld [vmem:[%s2792_s9 + $0x88] sm:$0xff] }
 0x7a5   :  { %v1644_v44 = vld [vmem:[%s2785_s11 + $0x12] ss:$8 sm:$0x3] }
 0x7a6   :  { %1932 = vmatmul.mubr.msk.f32.vlgmr.msra.gmra.mrb[10].mxu1 %vm716_vm6, %v1036_v43  ;;  %v1374_v43 = vsub.s32 0, %v2328_v61  ;;  %v1486_v61 = vld [vmem:[%s2793_s10 + $0x10] sm:$0xff] }
 0x7a7   :  { %2070 = vmatpush3.bf16.msra.mxu1 %v2069_v40  ;;  %1950 = vmatprep.mubr.msk.f32.mxu1 %vm2141_vm5, %v2142_v42  ;;  %v2121_v40 = vpack.c.bf16 %v1408_v39, %v1407_v38  ;;  %v2127_v57 = vpack.c.bf16 %v1487_v56, %v1486_v61 }
 0x7a8   :  { %2071 = vmatprep.subr.bf16.mxu1 %v2140_v41  ;;  %v1375_v46 = vrot.slane %v1644_v44, %v1374_v43 }
 0x7ab   :  { %2073 = vmatpush3.bf16.msra.mxu1 %v2072_v47  ;;  %v1379_v47 = vrot.slane %v1644_v44, %v1378_v45 }
 0x7ac   :  { %2074 = vmatprep.subr.bf16.mxu1 %v2140_v41 }
 0x7af   :  { %2076 = vmatpush3.bf16.msra.mxu1 %v2075_v50 }
 0x7b0   :  { %2077 = vmatprep.subr.bf16.mxu1 %v2140_v41 }
 0x7b3   :  { %2079 = vmatpush3.bf16.msra.mxu1 %v2078_v53 }
 0x7b4   :  { %2096 = vmatprep.subr.bf16.mxu1 %v2140_v41 }
 0x879   :  { %v1114_v2 = vpop.f32.mrb[10].mxu1 }
 0x87a   :  { %v1115_v3 = vadd.f32 %v1114_v2, %v1044_v1  ;;  %v1933_v4 = vpop.f32.mrb[11].mxu1 }
 0x87c   :  { %v1118_v5 = vmax.f32 %v1115_v3, 0.0 }
 0x87e   :  { %v1119_v6 = vsel %vm170_vm3, %v1118_v5, %v1115_v3  ;;  %vm1410_vm3 = vcmask 130048  }
 0x87f   :  { %1951 = vmatmul.mubr.msk.f32.vlgmr.msra.gmra.mrb[12].mxu1 %vm637_vm4, %v1119_v6 }
 0x880   :  { %2098 = vmatpush1.bf16.msra.mxu1 %v2097_v12 }
 0x881   :  { %2099 = vmatprep.subr.bf16.mxu1 %v2140_v41 }
 0x884   :  { %2101 = vmatpush1.bf16.msra.mxu1 %v2100_v14 }
 0x885   :  { %2102 = vmatprep.subr.bf16.mxu1 %v2140_v41 }
 0x888   :  { %2104 = vmatpush1.bf16.msra.mxu1 %v2103_v18 }
 0x889   :  { %2105 = vmatprep.subr.bf16.mxu1 %v2140_v41 }
 0x88c   :  { %2107 = vmatpush1.bf16.msra.mxu1 %v2106_v21 }
 0x88d   :  { %2108 = vmatprep.subr.bf16.mxu1 %v2140_v41 }
 0x890   :  { %2110 = vmatpush1.bf16.msra.mxu1 %v2109_v24 }
 0x891   :  { %2111 = vmatprep.subr.bf16.mxu1 %v2140_v41 }
 0x894   :  { %2113 = vmatpush1.bf16.msra.mxu1 %v2112_v27 }
 0x895   :  { %2114 = vmatprep.subr.bf16.mxu1 %v2140_v41 }
 0x898   :  { %2116 = vmatpush1.bf16.msra.mxu1 %v2115_v30 }
 0x899   :  { %2117 = vmatprep.subr.bf16.mxu1 %v2140_v41 }
 0x89c   :  { %2119 = vmatpush1.bf16.msra.mxu1 %v2118_v33 }
 0x89d   :  { %2120 = vmatprep.subr.bf16.mxu1 %v2140_v41 }
 0x8a0   :  { %2122 = vmatpush1.bf16.msra.mxu1 %v2121_v40 }
 0x8a1   :  { %2123 = vmatprep.subr.bf16.mxu1 %v2140_v41 }
 0x952   :  { %v1199_v35 = vpop.f32.mrb[12].mxu1 }
 0x953   :  { %v1200_v36 = vadd.f32 %v1199_v35, %v1129_v34  ;;  %v1952_v37 = vpop.f32.mrb[13].mxu1 }
 0x955   :  { %1643 = vmatmul.mubr.msk.f32.vlgmr.msra.gmra.mrb[18].mxu0 %vm716_vm6, %v1200_v36 }
 0xa28   :  { %v1364_v50 = vpop.f32.mrb[18].mxu0 }
 0xa29   :  { %v1382_v51 = vadd.f32 %v1375_v46, %v1364_v50  ;;  %v1366_v52 = vpop.f32.mrb[19].mxu0 }
 0xa2a   :  { %v1383_v53 = vadd.f32 %v1379_v47, %v1366_v52 }
 0xa2b   :  { %v1387_v55 = vmax.f32 %v1382_v51, 0.0 }
 0xa2c   :  { %1645 = vmatprep.mubr.msk.f32.mxu1 %vm1410_vm3, %v1383_v53 }
 0xa2d   :  { %1479 = vmatmul.mubr.f32.vlgmr.msra.gmra.mrb[14].mxu1 %v1387_v55 }
 0xa2e   :  { %2125 = vmatpush3.bf16.msra.mxu1 %v2124_v54  ;;  %1961 = vmatprep.mubr.msk.f32.mxu1 %vm2141_vm5, %v2142_v42 }
 0xa2f   :  { %2126 = vmatprep.subr.bf16.mxu1 %v2140_v41 }
 0xa32   :  { %2128 = vmatpush3.bf16.msra.mxu1 %v2127_v57 }
 0xa35   :  { %1962 = vmatmul.mubr.msk.f32.vlgmr.msra.gmra.mrb[14].mxu1 %vm716_vm6, %v2424_v58 }
 0xb08   :  { %v1557_v63 = vpop.f32.mrb[14].mxu1 }
 0xb09   :  { %v2130_v0 = vadd.f32 %v2129_v62, %v1557_v63  ;;  %v1963_v1 = vpop.f32.mrb[15].mxu1 }
 0xb0b   :  { %v1562_v42 = vsel %vm1410_vm3, %v2130_v0, 0.0 }
 0xb0c   :  { %1563 = vst [vmem:[%s2794_s12] sm:$0x3] %v1562_v42 }

</bundles_post_ra>
